<compile_context>
chip_gen: v5e
topology: v5e:2x2
jax: 0.10.0
libtpu: 0.0.40
codegen_flags: <defaults>
</compile_context>

<pallas_src>
import functools

import jax
import jax.numpy as jnp
from jax.experimental import pallas as pl
from jax.experimental.pallas import tpu as pltpu


def _embed_concat_kernel(x_ref, tT_ref, w_ref, b_ref, o_ref, *, C, OD, HW):
    """One batch element per grid step.

    x_ref : (1, C, HW)    image block (NCHW with H*W flattened into lanes)
    tT_ref: (E, N)        text, feature-major so E/OD live on sublanes (no transposes)
    w_ref : (OD, E)       Linear weight, PyTorch layout
    b_ref : (OD, 1)       Linear bias as a column
    o_ref : (1, C+OD, HW) output block
    """
    n = pl.program_id(0)
    E, N = tT_ref.shape

    # (1) pass-through: x fills the first C output channels (lane-dense copy).
    o_ref[0, 0:C, :] = x_ref[0]

    # (2) select text column n via a one-hot masked lane-reduce (no dynamic lane
    #     slicing, no relayouts), then broadcast it across all H*W lanes.
    onehot = jax.lax.broadcasted_iota(jnp.int32, (E, N), 1) == n
    t_col = jnp.sum(jnp.where(onehot, tT_ref[...], 0.0), axis=1, keepdims=True)  # (E, 1)
    t_bcast = jnp.broadcast_to(t_col, (E, HW))                                   # (E, HW)

    # (3) Linear + spatial "repeat" fused into one lane-dense MXU matmul:
    #     every column of the result equals W @ text_n; add the bias column.
    emb = jnp.dot(w_ref[...], t_bcast, preferred_element_type=jnp.float32)       # (OD, HW)
    o_ref[0, C:C + OD, :] = emb + b_ref[...]


def embedding_forward(x, text, weight, bias):
    """Pallas implementation of Embedding.forward.

    x:      (N, C, H, W)   with H == W (the PyTorch module repeats with x.size(2) twice)
    text:   (..., E) reshaped to (N, E)
    weight: (OD, E)  bias: (OD,)
    returns (N, C + OD, H, W)
    """
    N, C, H, W = x.shape
    OD, E = weight.shape
    assert H == W, "module uses x.size(2) for both spatial repeats"
    HW = H * W
    C_tot = C + OD

    x_f = x.astype(jnp.float32).reshape(N, C, HW)          # free reshape, lanes = HW
    tT = text.reshape(N, E).astype(jnp.float32).T           # (E, N), tiny
    b_col = bias.astype(jnp.float32).reshape(OD, 1)

    kernel = functools.partial(_embed_concat_kernel, C=C, OD=OD, HW=HW)

    out = pl.pallas_call(
        kernel,
        out_shape=jax.ShapeDtypeStruct((N, C_tot, HW), jnp.float32),
        grid=(N,),
        in_specs=[
            pl.BlockSpec((1, C, HW), lambda n: (n, 0, 0)),   # per-batch image block
            pl.BlockSpec((E, N), lambda n: (0, 0)),          # full text (tiny)
            pl.BlockSpec((OD, E), lambda n: (0, 0)),         # full weight
            pl.BlockSpec((OD, 1), lambda n: (0, 0)),         # full bias column
        ],
        out_specs=pl.BlockSpec((1, C_tot, HW), lambda n: (n, 0, 0)),
        compiler_params=pltpu.CompilerParams(
            dimension_semantics=("parallel",)),
    )(x_f, tT, weight.astype(jnp.float32), b_col)

    return out.reshape(N, C_tot, H, W)


if __name__ == "__main__":
    # TODO(synk): the module's debug print() calls are side effects only; not reproduced.
    N, C, H, W = 2, 4, 16, 16
    EMBED_DIM, OUT_DIM = 32, 12

    key = jax.random.PRNGKey(0)
    kx, kt, kw, kb = jax.random.split(key, 4)
    x = jax.random.normal(kx, (N, C, H, W), jnp.float32)
    text = jax.random.normal(kt, (N, EMBED_DIM), jnp.float32)
    weight = 0.02 * jax.random.normal(kw, (OUT_DIM, EMBED_DIM), jnp.float32)
    bias = 0.02 * jax.random.normal(kb, (OUT_DIM,), jnp.float32)

    fwd = jax.jit(embedding_forward)
    out = jax.block_until_ready(fwd(x, text, weight, bias))

    # Pure-JAX reference of the PyTorch forward.
    emb_ref = text.reshape(N, EMBED_DIM) @ weight.T + bias           # (N, OD)
    emb_img = jnp.broadcast_to(emb_ref[:, :, None, None], (N, OUT_DIM, H, W))
    ref = jnp.concatenate([x, emb_img], axis=1)

    assert out.shape == (N, C + OUT_DIM, H, W), out.shape
    assert out.dtype == jnp.float32
    assert bool(jnp.all(jnp.isfinite(out)))
    assert bool(jnp.allclose(out, ref, atol=1e-2, rtol=1e-2)), float(
        jnp.max(jnp.abs(out - ref)))
    print("KERNEL_OK")
</pallas_src>

<mosaic_0001>
module attributes {stable_mosaic.version = 11 : i64} {
  func.func @_embed_concat_kernel(%arg0: i32, %arg1: memref<1x4x256xf32, #tpu.memory_space<vmem>>, %arg2: memref<32x2xf32, #tpu.memory_space<vmem>>, %arg3: memref<12x32xf32, #tpu.memory_space<vmem>>, %arg4: memref<12x1xf32, #tpu.memory_space<vmem>>, %arg5: memref<1x16x256xf32, #tpu.memory_space<vmem>>) attributes {dimension_semantics = [#tpu.dimension_semantics<parallel>], iteration_bounds = array<i64: 2>, scalar_prefetch = 0 : i64, scratch_operands = 0 : i64, tpu.core_type = #tpu.core_type<tc>, window_params = [{transform_indices = @transform_0, window_bounds = array<i64: 1, 4, 256>}, {pipeline_mode = #tpu.pipeline_mode<synchronous>, transform_indices = @transform_1, window_bounds = array<i64: 32, 2>}, {pipeline_mode = #tpu.pipeline_mode<synchronous>, transform_indices = @transform_2, window_bounds = array<i64: 12, 32>}, {pipeline_mode = #tpu.pipeline_mode<synchronous>, transform_indices = @transform_3, window_bounds = array<i64: 12, 1>}, {transform_indices = @transform_4, window_bounds = array<i64: 1, 16, 256>}]} {
    %c0 = arith.constant 0 : index
    %c0_0 = arith.constant 0 : index
    %c0_1 = arith.constant 0 : index
    %0 = vector.load %arg1[%c0, %c0_0, %c0_1] : memref<1x4x256xf32, #tpu.memory_space<vmem>>, vector<1x4x256xf32>
    %1 = vector.shape_cast %0 : vector<1x4x256xf32> to vector<4x256xf32>
    %c0_2 = arith.constant 0 : index
    %c0_3 = arith.constant 0 : index
    %c0_4 = arith.constant 0 : index
    %2 = vector.load %arg5[%c0_2, %c0_3, %c0_4] : memref<1x16x256xf32, #tpu.memory_space<vmem>>, vector<1x4x256xf32>
    %3 = vector.shape_cast %2 : vector<1x4x256xf32> to vector<4x256xf32>
    %4 = vector.shape_cast %1 : vector<4x256xf32> to vector<1x4x256xf32>
    tpu.vector_store %arg5[%c0_2, %c0_3, %c0_4], %4 {strides = array<i32>} : memref<1x16x256xf32, #tpu.memory_space<vmem>>, vector<1x4x256xf32>,
    %5 = tpu.iota {dimensions = array<i32: 1>} : vector<32x2xi32>
    %6 = vector.broadcast %arg0 : i32 to vector<32x2xi32>
    %7 = arith.cmpi eq, %5, %6 : vector<32x2xi32>
    %c0_5 = arith.constant 0 : index
    %c0_6 = arith.constant 0 : index
    %8 = vector.load %arg2[%c0_5, %c0_6] : memref<32x2xf32, #tpu.memory_space<vmem>>, vector<32x2xf32>
    %cst = arith.constant 0.000000e+00 : f32
    %9 = vector.broadcast %cst : f32 to vector<32x2xf32>
    %10 = arith.select %7, %8, %9 : vector<32x2xi1>, vector<32x2xf32>
    %cst_7 = arith.constant dense<0.000000e+00> : vector<32xf32>
    %11 = vector.multi_reduction <add>, %10, %cst_7 [1] : vector<32x2xf32> to vector<32xf32>
    %12 = vector.shape_cast %11 : vector<32xf32> to vector<32x1xf32>
    %13 = vector.shape_cast %12 : vector<32x1xf32> to vector<32x1xf32>
    %14 = vector.broadcast %13 : vector<32x1xf32> to vector<32x256xf32>
    %c0_8 = arith.constant 0 : index
    %c0_9 = arith.constant 0 : index
    %15 = vector.load %arg3[%c0_8, %c0_9] : memref<12x32xf32, #tpu.memory_space<vmem>>, vector<12x32xf32>
    %cst_10 = arith.constant dense<0.000000e+00> : vector<12x256xf32>
    %16 = tpu.matmul %15, %14, %cst_10 {dimension_numbers = #tpu.dot_dimension_numbers<[1], [0], [0], [1], [0, 0, 1, 1], [], []>} : vector<12x32xf32>, vector<32x256xf32>, vector<12x256xf32> -> vector<12x256xf32>
    %c0_11 = arith.constant 0 : index
    %c0_12 = arith.constant 0 : index
    %17 = vector.load %arg4[%c0_11, %c0_12] : memref<12x1xf32, #tpu.memory_space<vmem>>, vector<12x1xf32>
    %18 = vector.broadcast %17 : vector<12x1xf32> to vector<12x256xf32>
    %19 = arith.addf %16, %18 : vector<12x256xf32>
    %c0_13 = arith.constant 0 : index
    %c4 = arith.constant 4 : index
    %c0_14 = arith.constant 0 : index
    %20 = vector.load %arg5[%c0_13, %c4, %c0_14] : memref<1x16x256xf32, #tpu.memory_space<vmem>>, vector<1x12x256xf32>
    %21 = vector.shape_cast %20 : vector<1x12x256xf32> to vector<12x256xf32>
    %22 = vector.shape_cast %19 : vector<12x256xf32> to vector<1x12x256xf32>
    tpu.vector_store %arg5[%c0_13, %c4, %c0_14], %22 {strides = array<i32>} : memref<1x16x256xf32, #tpu.memory_space<vmem>>, vector<1x12x256xf32>,
    return
  }
  func.func @transform_0(%arg0: i32) -> (i32, i32, i32) {
    %c0_i32 = arith.constant 0 : i32
    %c0_i32_0 = arith.constant 0 : i32
    %c0_i32_1 = arith.constant 0 : i32
    return %arg0, %c0_i32, %c0_i32_0 : i32, i32, i32
  }
  func.func @transform_1(%arg0: i32) -> (i32, i32) {
    %c0_i32 = arith.constant 0 : i32
    %c0_i32_0 = arith.constant 0 : i32
    %c0_i32_1 = arith.constant 0 : i32
    return %c0_i32, %c0_i32_0 : i32, i32
  }
  func.func @transform_2(%arg0: i32) -> (i32, i32) {
    %c0_i32 = arith.constant 0 : i32
    %c0_i32_0 = arith.constant 0 : i32
    %c0_i32_1 = arith.constant 0 : i32
    return %c0_i32, %c0_i32_0 : i32, i32
  }
  func.func @transform_3(%arg0: i32) -> (i32, i32) {
    %c0_i32 = arith.constant 0 : i32
    %c0_i32_0 = arith.constant 0 : i32
    %c0_i32_1 = arith.constant 0 : i32
    return %c0_i32, %c0_i32_0 : i32, i32
  }
  func.func @transform_4(%arg0: i32) -> (i32, i32, i32) {
    %c0_i32 = arith.constant 0 : i32
    %c0_i32_0 = arith.constant 0 : i32
    %c0_i32_1 = arith.constant 0 : i32
    return %arg0, %c0_i32, %c0_i32_0 : i32, i32, i32
  }
}

</mosaic_0001>

<bundles_post_ra>
// kernel: embedding_forward.1
= control target key start
LH: loop header
LB: loop body
LE: loop exit
PB: predicated region body
PF: predicated region fallthrough
CT: control target
= control target key end

     0   :  { %s407_s15 = smov 0   ;;  %s453_s0 = inlined_call_operand.vmem [shape: f32[2,4,256], index: 0, kind: input, shape index: {}]   ;;  %s454_s1 = inlined_call_operand.vmem [shape: f32[32,2], index: 1, kind: input, shape index: {}]   ;;  %s455_s2 = inlined_call_operand.vmem [shape: f32[12,32], index: 2, kind: input, shape index: {}]   ;;  %s456_s3 = inlined_call_operand.vmem [shape: f32[12,1], index: 3, kind: input, shape index: {}]   ;;  %s457_s4 = inlined_call_operand.vmem [shape: f32[2,16,256], index: 4, kind: output, shape index: {}]  }
   0x1 LB: > { %s413_s16 = sadd.s32 4294967295, %s379_s15   ;;  %p347_p0 = scmp.ge.s32.totalorder %s379_s15, 1  ;;  %s379_s15 = sphi %s407_s15, %s14_s15  }
   0x2   : > { %p162_p1 = scmp.lt.s32.totalorder %s379_s15, 3 }
   0x4   : > { %p163_p2 = pnand %p347_p0, %p162_p1 }
   0x5   : > { %p188_p3 = scmp.lt.s32.totalorder (!%p163_p2), %s413_s16, 1 }
   0x6   : > { %166 = sbr.rel (%p163_p2) target bundleno = 281 (0x119), region = 36 }
   0xb   : > { %v207_v0 = vlaneseq  ;;  %v209_v1 = vstv %s413_s16  ;;  %v214_v3 = vld [vmem:[%s454_s1 + $0x18] sm:$0xff]  ;;  %v212_v4 = vld [vmem:[%s454_s1 + $0x8] sm:$0xff]  ;;  %vm219_vm0 = vcmask 15360   ;;  %v213_v9 = vld [vmem:[%s454_s1 + $0x10] sm:$0xff]  ;;  %v381_v16 = vmov 0   ;;  %s459_s16 = smov (!%p188_p3, %s413_s16), 1 }
   0xc   : > { %v211_v10 = vld [vmem:[%s454_s1] sm:$0xff]  ;;  %371 = vset.pattern.permute.xlu2 %v381_v16  ;;  %372 = vset.pattern.permute.xlu0 %v381_v16  ;;  %v235_v17 = vld [vmem:[%s456_s3 + $0x8] sm:$0xf]  ;;  %vm246_vm2 = vcmask 261120   ;;  %s356_s7 = sshll.u32 %s459_s16, 3  ;;  %s357_s11 = sshll.u32 %s459_s16, 5 }
   0xd   : > { %v208_v2 = vand.u32 127, %v207_v0  ;;  %v234_v15 = vld [vmem:[%s456_s3] sm:$0xff]  ;;  %v233_v23 = vld [vmem:[%s455_s2 + $0x8] sm:$0xf]  ;;  %s192_s10 = scalar_lea.vmem %s453_s0, %s356_s7  ;;  %s197_s14 = scalar_lea.vmem %s457_s4, %s357_s11  ;;  %vm278_vm3 = vcmask 1043456  }
   0xe   : > { %238 = vperm.xlu2 %371, %v234_v15   ;;  %v232_v22 = vld [vmem:[%s455_s2] sm:$0xff] }
   0xf   : > { %vm210_vm1 = vcmp.eq.s32.totalorder %v208_v2, %v209_v1  ;;  %v198_v24 = vld [vmem:[%s192_s10] sm:$0xff] }
  0x10   : > { %v218_v5 = vsel %vm210_vm1, %v214_v3, 0.0  ;;  %v216_v6 = vsel %vm210_vm1, %v212_v4, 0.0  ;;  %v217_v11 = vsel %vm210_vm1, %v213_v9, 0.0  ;;  %v215_v12 = vsel %vm210_vm1, %v211_v10, 0.0  ;;  %200 = vst [vmem:[#allocation1] ss:$2 sm:$0xff] %v198_v24 }
  0x11   : > { %v229_v7 = vsel %vm219_vm0, %v218_v5, 0.0  ;;  %v223_v8 = vsel %vm219_vm0, %v216_v6, 0.0  ;;  %v226_v13 = vsel %vm219_vm0, %v217_v11, 0.0  ;;  %v220_v14 = vsel %vm219_vm0, %v215_v12, 0.0 }
  0x12   : > { %230 = vadd.xlane.f32.xlu0 %v229_v7  ;;  %224 = vadd.xlane.f32.xlu1 %v223_v8 }
  0x16   : > { %243 = vperm.xlu2 %371, %v235_v17  }
  0x17   : > { %v201_v25 = vld.sshfl [vmem:[#allocation1] sm:$0xff pattern:$0x75316420]  ;;  %v202_v26 = vld.sshfl [vmem:[#allocation1 + $0x8] sm:$0xff pattern:$0x75316420] }
  0x18   : > { %205 = vst [vmem:[%s197_s14] sm:$0xf] %v201_v25 }
  0x19   : > { %206 = vst [vmem:[%s197_s14 + $0x8] sm:$0xf] %v202_v26 }
  0x1a   : > { %227 = vadd.xlane.f32.xlu0 %v226_v13  ;;  %221 = vadd.xlane.f32.xlu1 %v220_v14 }
  0x68   : > { %v239_v27 = vpop.permute.xlu2 %238 }
  0x70   : > { %v244_v28 = vpop.permute.xlu2 %243 }
  0x85   : > { %v231_v18 = vpop.xlane.xlu0 %230  ;;  %v225_v19 = vpop.xlane.xlu1 %224 }
  0x86   : > { %265 = vmatpush.msra.mxu0 %v231_v18  ;;  %358 = vmatpush.msra.mxu1 %v231_v18 }
  0x8d   : > { %v228_v20 = vpop.xlane.xlu0 %227  ;;  %v222_v21 = vpop.xlane.xlu1 %221 }
  0x8e   : > { %266 = vmatpush.msra.mxu0 %v228_v20  ;;  %359 = vmatpush.msra.mxu1 %v228_v20 }
  0x90   : > { %267 = vmatpush.msra.mxu0 %v225_v19  ;;  %360 = vmatpush.msra.mxu1 %v225_v19 }
  0x92   : > { %268 = vmatpush.msra.mxu0 %v222_v21  ;;  %361 = vmatpush.msra.mxu1 %v222_v21 }
  0x93   : > { %352 = vmatmul.msk.f32.vlgmr.msra.gmra.mxu0 %vm246_vm2, %v232_v22  ;;  %353 = vmatmul.msk.f32.vlgmr.msra.gmra.mxu1 %vm246_vm2, %v233_v23 }
 0x110   : > { %v270_v29 = vpop.f32.mrf.mxu0  ;;  %v273_v30 = vpop.f32.mrf.mxu1 }
 0x111   : > { %v271_v31 = vadd.f32 %v270_v29, %v239_v27  ;;  %v274_v32 = vadd.f32 %v273_v30, %v244_v28 }
 0x113   : > { %v279_v33 = vrot.slane %v271_v31, 4  ;;  %v280_v34 = vrot.slane %v274_v32, 4 }
 0x115   : > { %284 = vst [vmem:[%s197_s14] sm:$0xf0] %v279_v33  ;;  %v281_v35 = vsel %vm278_vm3, %v279_v33, %v280_v34 }
 0x116   : > { %285 = vst [vmem:[%s197_s14 + $0x8] sm:$0xf0] %v279_v33 }
 0x117   : > { %286 = vst [vmem:[%s197_s14 + $0x10] sm:$0xff] %v281_v35 }
 0x118   : > { %287 = vst [vmem:[%s197_s14 + $0x18] sm:$0xff] %v281_v35 }
 0x119 PF: > { %s14_s15 = sadd.s32 1, %s379_s15  }
 0x11a   : > { %p11_p4 = scmp.ge.s32.totalorder %s14_s15, 4  }
 0x11c   :  { %13 = sbr.rel (!%p11_p4) target bundleno = 1 (0x1), region = 66 }

</bundles_post_ra>
